<compile_context>
chip_gen: v7x
topology: tpu7x:2x2x1
jax: 0.10.0
libtpu: 0.0.40
codegen_flags: <defaults>
</compile_context>

<pallas_src>
import math

import jax
import jax.numpy as jnp
from jax import lax
from jax.experimental import pallas as pl
from jax.experimental.pallas import tpu as pltpu

# ---- small, module-consistent hyperparameters ------------------------------
VOCAB = 50     # vocabulary size of the (synthetic) word embedding
B = 2          # batch
S = 8          # sequence length (tokens per news text); keeps sublane alignment
D = 32         # word_embedding_dim
H = 4          # num_attention_heads
DK = D // H    # per-head dim
QD = 16        # query_vector_dim (additive attention)
DROPOUT_P = 0.2  # dropout probability; identity in eval mode (training=False)
# TODO(synk): training-mode dropout (pltpu.prng_*) omitted; eval semantics only.


def text_encoder_kernel(ids_ref, emb_ref, wqkv_ref, bqkv_ref, wa_ref, ba_ref,
                        qv_ref, out_ref):
    """Whole-batch TextEncoder forward in one invocation.

    ids_ref  : (B*S, 1) int32  token ids
    emb_ref  : (VOCAB, D)      word-embedding table
    wqkv_ref : (D, 3D), bqkv_ref: (1, 3D)   fused Q|K|V projection
    wa_ref   : (D, QD), ba_ref: (1, QD), qv_ref: (QD, 1)  additive attention
    out_ref  : (B, D)          pooled news vectors
    """
    # ---- in-kernel embedding gather: one-hot (B*S,VOCAB) @ (VOCAB,D) on MXU ----
    ids = ids_ref[...]                                                  # (B*S, 1)
    vocab_iota = lax.broadcasted_iota(jnp.int32, (B * S, VOCAB), 1)
    onehot = (ids == vocab_iota).astype(jnp.float32)                    # (B*S, VOCAB)
    x = jnp.dot(onehot, emb_ref[...], preferred_element_type=jnp.float32)  # (B*S, D)
    # F.dropout(training=False) == identity.

    # ---- fused Q|K|V projection: one MXU matmul with a 96-lane output ----
    qkv = (jnp.dot(x, wqkv_ref[...], preferred_element_type=jnp.float32)
           + bqkv_ref[...])                                             # (B*S, 3D)

    scale = 1.0 / math.sqrt(DK)
    wa = wa_ref[...]                                                    # (D, QD)
    ba = ba_ref[...]                                                    # (1, QD)
    qv = qv_ref[...]                                                    # (QD, 1)

    rows = []
    for b in range(B):                         # static loop, B = 2
        r0 = b * S
        qkv_b = qkv[r0:r0 + S, :]              # (S, 3D), sublane-aligned static slice

        t_acc = jnp.zeros((S, QD), jnp.float32)
        ctxs = []
        for h in range(H):                     # static loop, H = 4
            lo = h * DK
            q_h = qkv_b[:, lo:lo + DK]                     # (S, DK)
            k_h = qkv_b[:, D + lo:D + lo + DK]             # (S, DK)
            v_h = qkv_b[:, 2 * D + lo:2 * D + lo + DK]     # (S, DK)

            # scores: contract the last dims (no explicit k_h.T materialized)
            s = lax.dot_general(q_h, k_h, (((1,), (1,)), ((), ())),
                                preferred_element_type=jnp.float32) * scale  # (S, S)
            s = s - jnp.max(s, axis=-1, keepdims=True)
            e = jnp.exp(s)
            p = e * pl.reciprocal(jnp.sum(e, axis=-1, keepdims=True),
                                  approx=True)                          # softmax rows

            ctx_h = jnp.dot(p, v_h, preferred_element_type=jnp.float32)  # (S, DK)
            ctxs.append(ctx_h)
            # additive projection accumulated per head -> no (S, D) lane concat
            t_acc = t_acc + jnp.dot(ctx_h, wa[lo:lo + DK, :],
                                    preferred_element_type=jnp.float32)  # (S, QD)

        t = jnp.tanh(t_acc + ba)                                        # (S, QD)
        # pooling scores as a (1, S) lane vector (no transpose of t)
        sc = lax.dot_general(qv, t, (((0,), (1,)), ((), ())),
                             preferred_element_type=jnp.float32)        # (1, S)
        sc = sc - jnp.max(sc, axis=-1, keepdims=True)
        e = jnp.exp(sc)
        w = e * pl.reciprocal(jnp.sum(e, axis=-1, keepdims=True),
                              approx=True)                              # (1, S)

        # pooled output accumulated per head
        pooled = [jnp.dot(w, ctxs[h], preferred_element_type=jnp.float32)
                  for h in range(H)]                                    # H x (1, DK)
        rows.append(jnp.concatenate(pooled, axis=-1))                   # (1, D)

    # single (B, D) store
    out_ref[...] = jnp.concatenate(rows, axis=0)


def text_encoder_forward(text_ids, emb_table, params):
    """text_ids: (B, S) int32; emb_table: (VOCAB, D) f32; returns (B, D) f32."""
    wq, bq, wk, bk, wv, bv, wa, ba, qv = params

    # Fuse Q|K|V weights/biases once in the wrapper.
    wqkv = jnp.concatenate([wq, wk, wv], axis=1)          # (D, 3D)
    bqkv = jnp.concatenate([bq, bk, bv], axis=1)          # (1, 3D)
    ids = text_ids.reshape(B * S, 1).astype(jnp.int32)    # (B*S, 1)

    vmem = pl.BlockSpec(memory_space=pltpu.MemorySpace.VMEM)
    out = pl.pallas_call(
        text_encoder_kernel,
        out_shape=jax.ShapeDtypeStruct((B, D), jnp.float32),
        in_specs=[vmem] * 7,          # whole arrays resident in VMEM, no pipelining
        out_specs=vmem,
    )(ids, emb_table, wqkv, bqkv, wa, ba, qv)
    return out                                            # (B, D)


def text_encoder_reference(text_ids, emb_table, params):
    """Pure-JAX reference mirroring the PyTorch forward (eval mode)."""
    wq, bq, wk, bk, wv, bv, wa, ba, qv = params
    x = jnp.take(emb_table, text_ids, axis=0).astype(jnp.float32)  # (B, S, D)

    q = x @ wq + bq
    k = x @ wk + bk
    v = x @ wv + bv
    qh = q.reshape(B, S, H, DK).transpose(0, 2, 1, 3)
    kh = k.reshape(B, S, H, DK).transpose(0, 2, 1, 3)
    vh = v.reshape(B, S, H, DK).transpose(0, 2, 1, 3)
    s = jnp.einsum("bhqd,bhkd->bhqk", qh, kh) / math.sqrt(DK)
    p = jax.nn.softmax(s, axis=-1)
    ctx = jnp.einsum("bhqk,bhkd->bhqd", p, vh).transpose(0, 2, 1, 3).reshape(B, S, D)

    t = jnp.tanh(ctx @ wa + ba)                 # (B, S, QD)
    sc = (t @ qv)[..., 0]                       # (B, S)
    w = jax.nn.softmax(sc, axis=-1)             # (B, S)
    return jnp.einsum("bs,bsd->bd", w, ctx)     # (B, D)


if __name__ == "__main__":
    key = jax.random.PRNGKey(0)
    keys = jax.random.split(key, 12)

    # Deterministic synthetic parameters (shapes per the module's __init__).
    emb_table = jax.random.normal(keys[0], (VOCAB, D), jnp.float32) * 0.1
    wq = jax.random.normal(keys[1], (D, D), jnp.float32) * 0.1
    bq = jax.random.normal(keys[2], (1, D), jnp.float32) * 0.1
    wk = jax.random.normal(keys[3], (D, D), jnp.float32) * 0.1
    bk = jax.random.normal(keys[4], (1, D), jnp.float32) * 0.1
    wv = jax.random.normal(keys[5], (D, D), jnp.float32) * 0.1
    bv = jax.random.normal(keys[6], (1, D), jnp.float32) * 0.1
    wa = jax.random.normal(keys[7], (D, QD), jnp.float32) * 0.1
    ba = jax.random.normal(keys[8], (1, QD), jnp.float32) * 0.1
    qv = jax.random.uniform(keys[9], (QD, 1), jnp.float32, -0.1, 0.1)
    params = (wq, bq, wk, bk, wv, bv, wa, ba, qv)

    text_ids = jax.random.randint(keys[10], (B, S), 0, VOCAB, jnp.int32)

    out = text_encoder_forward(text_ids, emb_table, params)
    out = jax.block_until_ready(out)

    ref = text_encoder_reference(text_ids, emb_table, params)
    assert out.shape == (B, D)
    # approx=True reciprocals (EUP) give ~1e-3 relative error on the softmax
    # normalizations; tolerance set accordingly.
    assert jnp.allclose(out, ref, atol=2e-3, rtol=2e-3), "mismatch vs JAX reference"

    print("KERNEL_OK")
</pallas_src>

<mosaic_0001>
module attributes {stable_mosaic.version = 11 : i64} {
  func.func @text_encoder_kernel(%arg0: memref<16x1xi32, #tpu.memory_space<vmem>>, %arg1: memref<50x32xf32, #tpu.memory_space<vmem>>, %arg2: memref<32x96xf32, #tpu.memory_space<vmem>>, %arg3: memref<1x96xf32, #tpu.memory_space<vmem>>, %arg4: memref<32x16xf32, #tpu.memory_space<vmem>>, %arg5: memref<1x16xf32, #tpu.memory_space<vmem>>, %arg6: memref<16x1xf32, #tpu.memory_space<vmem>>, %arg7: memref<2x32xf32, #tpu.memory_space<vmem>>) attributes {dimension_semantics = [], scalar_prefetch = 0 : i64, scratch_operands = 0 : i64, tpu.core_type = #tpu.core_type<tc>} {
    %c0 = arith.constant 0 : index
    %c0_0 = arith.constant 0 : index
    %0 = vector.load %arg0[%c0, %c0_0] : memref<16x1xi32, #tpu.memory_space<vmem>>, vector<16x1xi32>
    %1 = tpu.iota {dimensions = array<i32: 1>} : vector<16x50xi32>
    %2 = vector.broadcast %0 : vector<16x1xi32> to vector<16x50xi32>
    %3 = arith.cmpi eq, %2, %1 : vector<16x50xi32>
    %4 = arith.extui %3 : vector<16x50xi1> to vector<16x50xi32>
    %5 = arith.sitofp %4 : vector<16x50xi32> to vector<16x50xf32>
    %c0_1 = arith.constant 0 : index
    %c0_2 = arith.constant 0 : index
    %6 = vector.load %arg1[%c0_1, %c0_2] : memref<50x32xf32, #tpu.memory_space<vmem>>, vector<50x32xf32>
    %cst = arith.constant dense<0.000000e+00> : vector<16x32xf32>
    %7 = tpu.matmul %5, %6, %cst {dimension_numbers = #tpu.dot_dimension_numbers<[1], [0], [0], [1], [0, 0, 1, 1], [], []>} : vector<16x50xf32>, vector<50x32xf32>, vector<16x32xf32> -> vector<16x32xf32>
    %c0_3 = arith.constant 0 : index
    %c0_4 = arith.constant 0 : index
    %8 = vector.load %arg2[%c0_3, %c0_4] : memref<32x96xf32, #tpu.memory_space<vmem>>, vector<32x96xf32>
    %cst_5 = arith.constant dense<0.000000e+00> : vector<16x96xf32>
    %9 = tpu.matmul %7, %8, %cst_5 {dimension_numbers = #tpu.dot_dimension_numbers<[1], [0], [0], [1], [0, 0, 1, 1], [], []>} : vector<16x32xf32>, vector<32x96xf32>, vector<16x96xf32> -> vector<16x96xf32>
    %c0_6 = arith.constant 0 : index
    %c0_7 = arith.constant 0 : index
    %10 = vector.load %arg3[%c0_6, %c0_7] : memref<1x96xf32, #tpu.memory_space<vmem>>, vector<1x96xf32>
    %11 = vector.broadcast %10 : vector<1x96xf32> to vector<16x96xf32>
    %12 = arith.addf %9, %11 : vector<16x96xf32>
    %c0_8 = arith.constant 0 : index
    %c0_9 = arith.constant 0 : index
    %13 = vector.load %arg4[%c0_8, %c0_9] : memref<32x16xf32, #tpu.memory_space<vmem>>, vector<32x16xf32>
    %c0_10 = arith.constant 0 : index
    %c0_11 = arith.constant 0 : index
    %14 = vector.load %arg5[%c0_10, %c0_11] : memref<1x16xf32, #tpu.memory_space<vmem>>, vector<1x16xf32>
    %c0_12 = arith.constant 0 : index
    %c0_13 = arith.constant 0 : index
    %15 = vector.load %arg6[%c0_12, %c0_13] : memref<16x1xf32, #tpu.memory_space<vmem>>, vector<16x1xf32>
    %16 = vector.extract_strided_slice %12 {offsets = [0, 0], sizes = [8, 96], strides = [1, 1]} : vector<16x96xf32> to vector<8x96xf32>
    %cst_14 = arith.constant 0.000000e+00 : f32
    %17 = vector.broadcast %cst_14 : f32 to vector<8x16xf32>
    %18 = vector.extract_strided_slice %16 {offsets = [0, 0], sizes = [8, 8], strides = [1, 1]} : vector<8x96xf32> to vector<8x8xf32>
    %19 = vector.extract_strided_slice %16 {offsets = [0, 32], sizes = [8, 8], strides = [1, 1]} : vector<8x96xf32> to vector<8x8xf32>
    %20 = vector.extract_strided_slice %16 {offsets = [0, 64], sizes = [8, 8], strides = [1, 1]} : vector<8x96xf32> to vector<8x8xf32>
    %cst_15 = arith.constant dense<0.000000e+00> : vector<8x8xf32>
    %21 = tpu.matmul %18, %19, %cst_15 {dimension_numbers = #tpu.dot_dimension_numbers<[1], [1], [0], [0], [0, 0, 1, 0], [], []>} : vector<8x8xf32>, vector<8x8xf32>, vector<8x8xf32> -> vector<8x8xf32>
    %cst_16 = arith.constant 0.353553385 : f32
    %22 = vector.broadcast %cst_16 : f32 to vector<8x8xf32>
    %23 = arith.mulf %21, %22 : vector<8x8xf32>
    %cst_17 = arith.constant dense<0xFF800000> : vector<8xf32>
    %24 = vector.multi_reduction <maximumf>, %23, %cst_17 [1] : vector<8x8xf32> to vector<8xf32>
    %25 = vector.shape_cast %24 : vector<8xf32> to vector<8x1xf32>
    %26 = vector.broadcast %25 : vector<8x1xf32> to vector<8x8xf32>
    %27 = arith.subf %23, %26 : vector<8x8xf32>
    %28 = math.exp %27 : vector<8x8xf32>
    %cst_18 = arith.constant dense<0.000000e+00> : vector<8xf32>
    %29 = vector.multi_reduction <add>, %28, %cst_18 [1] : vector<8x8xf32> to vector<8xf32>
    %30 = vector.shape_cast %29 : vector<8xf32> to vector<8x1xf32>
    %31 = tpu.reciprocal %30 {approx = true} : vector<8x1xf32> -> vector<8x1xf32>
    %32 = vector.broadcast %31 : vector<8x1xf32> to vector<8x8xf32>
    %33 = arith.mulf %28, %32 : vector<8x8xf32>
    %cst_19 = arith.constant dense<0.000000e+00> : vector<8x8xf32>
    %34 = tpu.matmul %33, %20, %cst_19 {dimension_numbers = #tpu.dot_dimension_numbers<[1], [0], [0], [1], [0, 0, 1, 1], [], []>} : vector<8x8xf32>, vector<8x8xf32>, vector<8x8xf32> -> vector<8x8xf32>
    %35 = vector.extract_strided_slice %13 {offsets = [0, 0], sizes = [8, 16], strides = [1, 1]} : vector<32x16xf32> to vector<8x16xf32>
    %cst_20 = arith.constant dense<0.000000e+00> : vector<8x16xf32>
    %36 = tpu.matmul %34, %35, %cst_20 {dimension_numbers = #tpu.dot_dimension_numbers<[1], [0], [0], [1], [0, 0, 1, 1], [], []>} : vector<8x8xf32>, vector<8x16xf32>, vector<8x16xf32> -> vector<8x16xf32>
    %37 = arith.addf %17, %36 : vector<8x16xf32>
    %38 = vector.extract_strided_slice %16 {offsets = [0, 8], sizes = [8, 8], strides = [1, 1]} : vector<8x96xf32> to vector<8x8xf32>
    %39 = vector.extract_strided_slice %16 {offsets = [0, 40], sizes = [8, 8], strides = [1, 1]} : vector<8x96xf32> to vector<8x8xf32>
    %40 = vector.extract_strided_slice %16 {offsets = [0, 72], sizes = [8, 8], strides = [1, 1]} : vector<8x96xf32> to vector<8x8xf32>
    %cst_21 = arith.constant dense<0.000000e+00> : vector<8x8xf32>
    %41 = tpu.matmul %38, %39, %cst_21 {dimension_numbers = #tpu.dot_dimension_numbers<[1], [1], [0], [0], [0, 0, 1, 0], [], []>} : vector<8x8xf32>, vector<8x8xf32>, vector<8x8xf32> -> vector<8x8xf32>
    %cst_22 = arith.constant 0.353553385 : f32
    %42 = vector.broadcast %cst_22 : f32 to vector<8x8xf32>
    %43 = arith.mulf %41, %42 : vector<8x8xf32>
    %cst_23 = arith.constant dense<0xFF800000> : vector<8xf32>
    %44 = vector.multi_reduction <maximumf>, %43, %cst_23 [1] : vector<8x8xf32> to vector<8xf32>
    %45 = vector.shape_cast %44 : vector<8xf32> to vector<8x1xf32>
    %46 = vector.broadcast %45 : vector<8x1xf32> to vector<8x8xf32>
    %47 = arith.subf %43, %46 : vector<8x8xf32>
    %48 = math.exp %47 : vector<8x8xf32>
    %cst_24 = arith.constant dense<0.000000e+00> : vector<8xf32>
    %49 = vector.multi_reduction <add>, %48, %cst_24 [1] : vector<8x8xf32> to vector<8xf32>
    %50 = vector.shape_cast %49 : vector<8xf32> to vector<8x1xf32>
    %51 = tpu.reciprocal %50 {approx = true} : vector<8x1xf32> -> vector<8x1xf32>
    %52 = vector.broadcast %51 : vector<8x1xf32> to vector<8x8xf32>
    %53 = arith.mulf %48, %52 : vector<8x8xf32>
    %cst_25 = arith.constant dense<0.000000e+00> : vector<8x8xf32>
    %54 = tpu.matmul %53, %40, %cst_25 {dimension_numbers = #tpu.dot_dimension_numbers<[1], [0], [0], [1], [0, 0, 1, 1], [], []>} : vector<8x8xf32>, vector<8x8xf32>, vector<8x8xf32> -> vector<8x8xf32>
    %55 = vector.extract_strided_slice %13 {offsets = [8, 0], sizes = [8, 16], strides = [1, 1]} : vector<32x16xf32> to vector<8x16xf32>
    %cst_26 = arith.constant dense<0.000000e+00> : vector<8x16xf32>
    %56 = tpu.matmul %54, %55, %cst_26 {dimension_numbers = #tpu.dot_dimension_numbers<[1], [0], [0], [1], [0, 0, 1, 1], [], []>} : vector<8x8xf32>, vector<8x16xf32>, vector<8x16xf32> -> vector<8x16xf32>
    %57 = arith.addf %37, %56 : vector<8x16xf32>
    %58 = vector.extract_strided_slice %16 {offsets = [0, 16], sizes = [8, 8], strides = [1, 1]} : vector<8x96xf32> to vector<8x8xf32>
    %59 = vector.extract_strided_slice %16 {offsets = [0, 48], sizes = [8, 8], strides = [1, 1]} : vector<8x96xf32> to vector<8x8xf32>
    %60 = vector.extract_strided_slice %16 {offsets = [0, 80], sizes = [8, 8], strides = [1, 1]} : vector<8x96xf32> to vector<8x8xf32>
    %cst_27 = arith.constant dense<0.000000e+00> : vector<8x8xf32>
    %61 = tpu.matmul %58, %59, %cst_27 {dimension_numbers = #tpu.dot_dimension_numbers<[1], [1], [0], [0], [0, 0, 1, 0], [], []>} : vector<8x8xf32>, vector<8x8xf32>, vector<8x8xf32> -> vector<8x8xf32>
    %cst_28 = arith.constant 0.353553385 : f32
    %62 = vector.broadcast %cst_28 : f32 to vector<8x8xf32>
    %63 = arith.mulf %61, %62 : vector<8x8xf32>
    %cst_29 = arith.constant dense<0xFF800000> : vector<8xf32>
    %64 = vector.multi_reduction <maximumf>, %63, %cst_29 [1] : vector<8x8xf32> to vector<8xf32>
    %65 = vector.shape_cast %64 : vector<8xf32> to vector<8x1xf32>
    %66 = vector.broadcast %65 : vector<8x1xf32> to vector<8x8xf32>
    %67 = arith.subf %63, %66 : vector<8x8xf32>
    %68 = math.exp %67 : vector<8x8xf32>
    %cst_30 = arith.constant dense<0.000000e+00> : vector<8xf32>
    %69 = vector.multi_reduction <add>, %68, %cst_30 [1] : vector<8x8xf32> to vector<8xf32>
    %70 = vector.shape_cast %69 : vector<8xf32> to vector<8x1xf32>
    %71 = tpu.reciprocal %70 {approx = true} : vector<8x1xf32> -> vector<8x1xf32>
    %72 = vector.broadcast %71 : vector<8x1xf32> to vector<8x8xf32>
    %73 = arith.mulf %68, %72 : vector<8x8xf32>
    %cst_31 = arith.constant dense<0.000000e+00> : vector<8x8xf32>
    %74 = tpu.matmul %73, %60, %cst_31 {dimension_numbers = #tpu.dot_dimension_numbers<[1], [0], [0], [1], [0, 0, 1, 1], [], []>} : vector<8x8xf32>, vector<8x8xf32>, vector<8x8xf32> -> vector<8x8xf32>
    %75 = vector.extract_strided_slice %13 {offsets = [16, 0], sizes = [8, 16], strides = [1, 1]} : vector<32x16xf32> to vector<8x16xf32>
    %cst_32 = arith.constant dense<0.000000e+00> : vector<8x16xf32>
    %76 = tpu.matmul %74, %75, %cst_32 {dimension_numbers = #tpu.dot_dimension_numbers<[1], [0], [0], [1], [0, 0, 1, 1], [], []>} : vector<8x8xf32>, vector<8x16xf32>, vector<8x16xf32> -> vector<8x16xf32>
    %77 = arith.addf %57, %76 : vector<8x16xf32>
    %78 = vector.extract_strided_slice %16 {offsets = [0, 24], sizes = [8, 8], strides = [1, 1]} : vector<8x96xf32> to vector<8x8xf32>
    %79 = vector.extract_strided_slice %16 {offsets = [0, 56], sizes = [8, 8], strides = [1, 1]} : vector<8x96xf32> to vector<8x8xf32>
    %80 = vector.extract_strided_slice %16 {offsets = [0, 88], sizes = [8, 8], strides = [1, 1]} : vector<8x96xf32> to vector<8x8xf32>
    %cst_33 = arith.constant dense<0.000000e+00> : vector<8x8xf32>
    %81 = tpu.matmul %78, %79, %cst_33 {dimension_numbers = #tpu.dot_dimension_numbers<[1], [1], [0], [0], [0, 0, 1, 0], [], []>} : vector<8x8xf32>, vector<8x8xf32>, vector<8x8xf32> -> vector<8x8xf32>
    %cst_34 = arith.constant 0.353553385 : f32
    %82 = vector.broadcast %cst_34 : f32 to vector<8x8xf32>
    %83 = arith.mulf %81, %82 : vector<8x8xf32>
    %cst_35 = arith.constant dense<0xFF800000> : vector<8xf32>
    %84 = vector.multi_reduction <maximumf>, %83, %cst_35 [1] : vector<8x8xf32> to vector<8xf32>
    %85 = vector.shape_cast %84 : vector<8xf32> to vector<8x1xf32>
    %86 = vector.broadcast %85 : vector<8x1xf32> to vector<8x8xf32>
    %87 = arith.subf %83, %86 : vector<8x8xf32>
    %88 = math.exp %87 : vector<8x8xf32>
    %cst_36 = arith.constant dense<0.000000e+00> : vector<8xf32>
    %89 = vector.multi_reduction <add>, %88, %cst_36 [1] : vector<8x8xf32> to vector<8xf32>
    %90 = vector.shape_cast %89 : vector<8xf32> to vector<8x1xf32>
    %91 = tpu.reciprocal %90 {approx = true} : vector<8x1xf32> -> vector<8x1xf32>
    %92 = vector.broadcast %91 : vector<8x1xf32> to vector<8x8xf32>
    %93 = arith.mulf %88, %92 : vector<8x8xf32>
    %cst_37 = arith.constant dense<0.000000e+00> : vector<8x8xf32>
    %94 = tpu.matmul %93, %80, %cst_37 {dimension_numbers = #tpu.dot_dimension_numbers<[1], [0], [0], [1], [0, 0, 1, 1], [], []>} : vector<8x8xf32>, vector<8x8xf32>, vector<8x8xf32> -> vector<8x8xf32>
    %95 = vector.extract_strided_slice %13 {offsets = [24, 0], sizes = [8, 16], strides = [1, 1]} : vector<32x16xf32> to vector<8x16xf32>
    %cst_38 = arith.constant dense<0.000000e+00> : vector<8x16xf32>
    %96 = tpu.matmul %94, %95, %cst_38 {dimension_numbers = #tpu.dot_dimension_numbers<[1], [0], [0], [1], [0, 0, 1, 1], [], []>} : vector<8x8xf32>, vector<8x16xf32>, vector<8x16xf32> -> vector<8x16xf32>
    %97 = arith.addf %77, %96 : vector<8x16xf32>
    %98 = vector.broadcast %14 : vector<1x16xf32> to vector<8x16xf32>
    %99 = arith.addf %97, %98 : vector<8x16xf32>
    %100 = math.tanh %99 : vector<8x16xf32>
    %cst_39 = arith.constant dense<0.000000e+00> : vector<1x8xf32>
    %101 = tpu.matmul %15, %100, %cst_39 {dimension_numbers = #tpu.dot_dimension_numbers<[0], [1], [1], [0], [0, 1, 1, 0], [], []>} : vector<16x1xf32>, vector<8x16xf32>, vector<1x8xf32> -> vector<1x8xf32>
    %cst_40 = arith.constant dense<0xFF800000> : vector<1xf32>
    %102 = vector.multi_reduction <maximumf>, %101, %cst_40 [1] : vector<1x8xf32> to vector<1xf32>
    %103 = vector.shape_cast %102 : vector<1xf32> to vector<1x1xf32>
    %104 = vector.broadcast %103 : vector<1x1xf32> to vector<1x8xf32>
    %105 = arith.subf %101, %104 : vector<1x8xf32>
    %106 = math.exp %105 : vector<1x8xf32>
    %cst_41 = arith.constant dense<0.000000e+00> : vector<1xf32>
    %107 = vector.multi_reduction <add>, %106, %cst_41 [1] : vector<1x8xf32> to vector<1xf32>
    %108 = vector.shape_cast %107 : vector<1xf32> to vector<1x1xf32>
    %109 = tpu.reciprocal %108 {approx = true} : vector<1x1xf32> -> vector<1x1xf32>
    %110 = vector.broadcast %109 : vector<1x1xf32> to vector<1x8xf32>
    %111 = arith.mulf %106, %110 : vector<1x8xf32>
    %cst_42 = arith.constant dense<0.000000e+00> : vector<1x8xf32>
    %112 = tpu.matmul %111, %34, %cst_42 {dimension_numbers = #tpu.dot_dimension_numbers<[1], [0], [0], [1], [0, 0, 1, 1], [], []>} : vector<1x8xf32>, vector<8x8xf32>, vector<1x8xf32> -> vector<1x8xf32>
    %cst_43 = arith.constant dense<0.000000e+00> : vector<1x8xf32>
    %113 = tpu.matmul %111, %54, %cst_43 {dimension_numbers = #tpu.dot_dimension_numbers<[1], [0], [0], [1], [0, 0, 1, 1], [], []>} : vector<1x8xf32>, vector<8x8xf32>, vector<1x8xf32> -> vector<1x8xf32>
    %cst_44 = arith.constant dense<0.000000e+00> : vector<1x8xf32>
    %114 = tpu.matmul %111, %74, %cst_44 {dimension_numbers = #tpu.dot_dimension_numbers<[1], [0], [0], [1], [0, 0, 1, 1], [], []>} : vector<1x8xf32>, vector<8x8xf32>, vector<1x8xf32> -> vector<1x8xf32>
    %cst_45 = arith.constant dense<0.000000e+00> : vector<1x8xf32>
    %115 = tpu.matmul %111, %94, %cst_45 {dimension_numbers = #tpu.dot_dimension_numbers<[1], [0], [0], [1], [0, 0, 1, 1], [], []>} : vector<1x8xf32>, vector<8x8xf32>, vector<1x8xf32> -> vector<1x8xf32>
    %116 = tpu.concatenate %112, %113, %114, %115 in 1 : vector<1x8xf32>, vector<1x8xf32>, vector<1x8xf32>, vector<1x8xf32> -> vector<1x32xf32>
    %117 = vector.extract_strided_slice %12 {offsets = [8, 0], sizes = [8, 96], strides = [1, 1]} : vector<16x96xf32> to vector<8x96xf32>
    %cst_46 = arith.constant 0.000000e+00 : f32
    %118 = vector.broadcast %cst_46 : f32 to vector<8x16xf32>
    %119 = vector.extract_strided_slice %117 {offsets = [0, 0], sizes = [8, 8], strides = [1, 1]} : vector<8x96xf32> to vector<8x8xf32>
    %120 = vector.extract_strided_slice %117 {offsets = [0, 32], sizes = [8, 8], strides = [1, 1]} : vector<8x96xf32> to vector<8x8xf32>
    %121 = vector.extract_strided_slice %117 {offsets = [0, 64], sizes = [8, 8], strides = [1, 1]} : vector<8x96xf32> to vector<8x8xf32>
    %cst_47 = arith.constant dense<0.000000e+00> : vector<8x8xf32>
    %122 = tpu.matmul %119, %120, %cst_47 {dimension_numbers = #tpu.dot_dimension_numbers<[1], [1], [0], [0], [0, 0, 1, 0], [], []>} : vector<8x8xf32>, vector<8x8xf32>, vector<8x8xf32> -> vector<8x8xf32>
    %cst_48 = arith.constant 0.353553385 : f32
    %123 = vector.broadcast %cst_48 : f32 to vector<8x8xf32>
    %124 = arith.mulf %122, %123 : vector<8x8xf32>
    %cst_49 = arith.constant dense<0xFF800000> : vector<8xf32>
    %125 = vector.multi_reduction <maximumf>, %124, %cst_49 [1] : vector<8x8xf32> to vector<8xf32>
    %126 = vector.shape_cast %125 : vector<8xf32> to vector<8x1xf32>
    %127 = vector.broadcast %126 : vector<8x1xf32> to vector<8x8xf32>
    %128 = arith.subf %124, %127 : vector<8x8xf32>
    %129 = math.exp %128 : vector<8x8xf32>
    %cst_50 = arith.constant dense<0.000000e+00> : vector<8xf32>
    %130 = vector.multi_reduction <add>, %129, %cst_50 [1] : vector<8x8xf32> to vector<8xf32>
    %131 = vector.shape_cast %130 : vector<8xf32> to vector<8x1xf32>
    %132 = tpu.reciprocal %131 {approx = true} : vector<8x1xf32> -> vector<8x1xf32>
    %133 = vector.broadcast %132 : vector<8x1xf32> to vector<8x8xf32>
    %134 = arith.mulf %129, %133 : vector<8x8xf32>
    %cst_51 = arith.constant dense<0.000000e+00> : vector<8x8xf32>
    %135 = tpu.matmul %134, %121, %cst_51 {dimension_numbers = #tpu.dot_dimension_numbers<[1], [0], [0], [1], [0, 0, 1, 1], [], []>} : vector<8x8xf32>, vector<8x8xf32>, vector<8x8xf32> -> vector<8x8xf32>
    %136 = vector.extract_strided_slice %13 {offsets = [0, 0], sizes = [8, 16], strides = [1, 1]} : vector<32x16xf32> to vector<8x16xf32>
    %cst_52 = arith.constant dense<0.000000e+00> : vector<8x16xf32>
    %137 = tpu.matmul %135, %136, %cst_52 {dimension_numbers = #tpu.dot_dimension_numbers<[1], [0], [0], [1], [0, 0, 1, 1], [], []>} : vector<8x8xf32>, vector<8x16xf32>, vector<8x16xf32> -> vector<8x16xf32>
    %138 = arith.addf %118, %137 : vector<8x16xf32>
    %139 = vector.extract_strided_slice %117 {offsets = [0, 8], sizes = [8, 8], strides = [1, 1]} : vector<8x96xf32> to vector<8x8xf32>
    %140 = vector.extract_strided_slice %117 {offsets = [0, 40], sizes = [8, 8], strides = [1, 1]} : vector<8x96xf32> to vector<8x8xf32>
    %141 = vector.extract_strided_slice %117 {offsets = [0, 72], sizes = [8, 8], strides = [1, 1]} : vector<8x96xf32> to vector<8x8xf32>
    %cst_53 = arith.constant dense<0.000000e+00> : vector<8x8xf32>
    %142 = tpu.matmul %139, %140, %cst_53 {dimension_numbers = #tpu.dot_dimension_numbers<[1], [1], [0], [0], [0, 0, 1, 0], [], []>} : vector<8x8xf32>, vector<8x8xf32>, vector<8x8xf32> -> vector<8x8xf32>
    %cst_54 = arith.constant 0.353553385 : f32
    %143 = vector.broadcast %cst_54 : f32 to vector<8x8xf32>
    %144 = arith.mulf %142, %143 : vector<8x8xf32>
    %cst_55 = arith.constant dense<0xFF800000> : vector<8xf32>
    %145 = vector.multi_reduction <maximumf>, %144, %cst_55 [1] : vector<8x8xf32> to vector<8xf32>
    %146 = vector.shape_cast %145 : vector<8xf32> to vector<8x1xf32>
    %147 = vector.broadcast %146 : vector<8x1xf32> to vector<8x8xf32>
    %148 = arith.subf %144, %147 : vector<8x8xf32>
    %149 = math.exp %148 : vector<8x8xf32>
    %cst_56 = arith.constant dense<0.000000e+00> : vector<8xf32>
    %150 = vector.multi_reduction <add>, %149, %cst_56 [1] : vector<8x8xf32> to vector<8xf32>
    %151 = vector.shape_cast %150 : vector<8xf32> to vector<8x1xf32>
    %152 = tpu.reciprocal %151 {approx = true} : vector<8x1xf32> -> vector<8x1xf32>
    %153 = vector.broadcast %152 : vector<8x1xf32> to vector<8x8xf32>
    %154 = arith.mulf %149, %153 : vector<8x8xf32>
    %cst_57 = arith.constant dense<0.000000e+00> : vector<8x8xf32>
    %155 = tpu.matmul %154, %141, %cst_57 {dimension_numbers = #tpu.dot_dimension_numbers<[1], [0], [0], [1], [0, 0, 1, 1], [], []>} : vector<8x8xf32>, vector<8x8xf32>, vector<8x8xf32> -> vector<8x8xf32>
    %156 = vector.extract_strided_slice %13 {offsets = [8, 0], sizes = [8, 16], strides = [1, 1]} : vector<32x16xf32> to vector<8x16xf32>
    %cst_58 = arith.constant dense<0.000000e+00> : vector<8x16xf32>
    %157 = tpu.matmul %155, %156, %cst_58 {dimension_numbers = #tpu.dot_dimension_numbers<[1], [0], [0], [1], [0, 0, 1, 1], [], []>} : vector<8x8xf32>, vector<8x16xf32>, vector<8x16xf32> -> vector<8x16xf32>
    %158 = arith.addf %138, %157 : vector<8x16xf32>
    %159 = vector.extract_strided_slice %117 {offsets = [0, 16], sizes = [8, 8], strides = [1, 1]} : vector<8x96xf32> to vector<8x8xf32>
    %160 = vector.extract_strided_slice %117 {offsets = [0, 48], sizes = [8, 8], strides = [1, 1]} : vector<8x96xf32> to vector<8x8xf32>
    %161 = vector.extract_strided_slice %117 {offsets = [0, 80], sizes = [8, 8], strides = [1, 1]} : vector<8x96xf32> to vector<8x8xf32>
    %cst_59 = arith.constant dense<0.000000e+00> : vector<8x8xf32>
    %162 = tpu.matmul %159, %160, %cst_59 {dimension_numbers = #tpu.dot_dimension_numbers<[1], [1], [0], [0], [0, 0, 1, 0], [], []>} : vector<8x8xf32>, vector<8x8xf32>, vector<8x8xf32> -> vector<8x8xf32>
    %cst_60 = arith.constant 0.353553385 : f32
    %163 = vector.broadcast %cst_60 : f32 to vector<8x8xf32>
    %164 = arith.mulf %162, %163 : vector<8x8xf32>
    %cst_61 = arith.constant dense<0xFF800000> : vector<8xf32>
    %165 = vector.multi_reduction <maximumf>, %164, %cst_61 [1] : vector<8x8xf32> to vector<8xf32>
    %166 = vector.shape_cast %165 : vector<8xf32> to vector<8x1xf32>
    %167 = vector.broadcast %166 : vector<8x1xf32> to vector<8x8xf32>
    %168 = arith.subf %164, %167 : vector<8x8xf32>
    %169 = math.exp %168 : vector<8x8xf32>
    %cst_62 = arith.constant dense<0.000000e+00> : vector<8xf32>
    %170 = vector.multi_reduction <add>, %169, %cst_62 [1] : vector<8x8xf32> to vector<8xf32>
    %171 = vector.shape_cast %170 : vector<8xf32> to vector<8x1xf32>
    %172 = tpu.reciprocal %171 {approx = true} : vector<8x1xf32> -> vector<8x1xf32>
    %173 = vector.broadcast %172 : vector<8x1xf32> to vector<8x8xf32>
    %174 = arith.mulf %169, %173 : vector<8x8xf32>
    %cst_63 = arith.constant dense<0.000000e+00> : vector<8x8xf32>
    %175 = tpu.matmul %174, %161, %cst_63 {dimension_numbers = #tpu.dot_dimension_numbers<[1], [0], [0], [1], [0, 0, 1, 1], [], []>} : vector<8x8xf32>, vector<8x8xf32>, vector<8x8xf32> -> vector<8x8xf32>
    %176 = vector.extract_strided_slice %13 {offsets = [16, 0], sizes = [8, 16], strides = [1, 1]} : vector<32x16xf32> to vector<8x16xf32>
    %cst_64 = arith.constant dense<0.000000e+00> : vector<8x16xf32>
    %177 = tpu.matmul %175, %176, %cst_64 {dimension_numbers = #tpu.dot_dimension_numbers<[1], [0], [0], [1], [0, 0, 1, 1], [], []>} : vector<8x8xf32>, vector<8x16xf32>, vector<8x16xf32> -> vector<8x16xf32>
    %178 = arith.addf %158, %177 : vector<8x16xf32>
    %179 = vector.extract_strided_slice %117 {offsets = [0, 24], sizes = [8, 8], strides = [1, 1]} : vector<8x96xf32> to vector<8x8xf32>
    %180 = vector.extract_strided_slice %117 {offsets = [0, 56], sizes = [8, 8], strides = [1, 1]} : vector<8x96xf32> to vector<8x8xf32>
    %181 = vector.extract_strided_slice %117 {offsets = [0, 88], sizes = [8, 8], strides = [1, 1]} : vector<8x96xf32> to vector<8x8xf32>
    %cst_65 = arith.constant dense<0.000000e+00> : vector<8x8xf32>
    %182 = tpu.matmul %179, %180, %cst_65 {dimension_numbers = #tpu.dot_dimension_numbers<[1], [1], [0], [0], [0, 0, 1, 0], [], []>} : vector<8x8xf32>, vector<8x8xf32>, vector<8x8xf32> -> vector<8x8xf32>
    %cst_66 = arith.constant 0.353553385 : f32
    %183 = vector.broadcast %cst_66 : f32 to vector<8x8xf32>
    %184 = arith.mulf %182, %183 : vector<8x8xf32>
    %cst_67 = arith.constant dense<0xFF800000> : vector<8xf32>
    %185 = vector.multi_reduction <maximumf>, %184, %cst_67 [1] : vector<8x8xf32> to vector<8xf32>
    %186 = vector.shape_cast %185 : vector<8xf32> to vector<8x1xf32>
    %187 = vector.broadcast %186 : vector<8x1xf32> to vector<8x8xf32>
    %188 = arith.subf %184, %187 : vector<8x8xf32>
    %189 = math.exp %188 : vector<8x8xf32>
    %cst_68 = arith.constant dense<0.000000e+00> : vector<8xf32>
    %190 = vector.multi_reduction <add>, %189, %cst_68 [1] : vector<8x8xf32> to vector<8xf32>
    %191 = vector.shape_cast %190 : vector<8xf32> to vector<8x1xf32>
    %192 = tpu.reciprocal %191 {approx = true} : vector<8x1xf32> -> vector<8x1xf32>
    %193 = vector.broadcast %192 : vector<8x1xf32> to vector<8x8xf32>
    %194 = arith.mulf %189, %193 : vector<8x8xf32>
    %cst_69 = arith.constant dense<0.000000e+00> : vector<8x8xf32>
    %195 = tpu.matmul %194, %181, %cst_69 {dimension_numbers = #tpu.dot_dimension_numbers<[1], [0], [0], [1], [0, 0, 1, 1], [], []>} : vector<8x8xf32>, vector<8x8xf32>, vector<8x8xf32> -> vector<8x8xf32>
    %196 = vector.extract_strided_slice %13 {offsets = [24, 0], sizes = [8, 16], strides = [1, 1]} : vector<32x16xf32> to vector<8x16xf32>
    %cst_70 = arith.constant dense<0.000000e+00> : vector<8x16xf32>
    %197 = tpu.matmul %195, %196, %cst_70 {dimension_numbers = #tpu.dot_dimension_numbers<[1], [0], [0], [1], [0, 0, 1, 1], [], []>} : vector<8x8xf32>, vector<8x16xf32>, vector<8x16xf32> -> vector<8x16xf32>
    %198 = arith.addf %178, %197 : vector<8x16xf32>
    %199 = vector.broadcast %14 : vector<1x16xf32> to vector<8x16xf32>
    %200 = arith.addf %198, %199 : vector<8x16xf32>
    %201 = math.tanh %200 : vector<8x16xf32>
    %cst_71 = arith.constant dense<0.000000e+00> : vector<1x8xf32>
    %202 = tpu.matmul %15, %201, %cst_71 {dimension_numbers = #tpu.dot_dimension_numbers<[0], [1], [1], [0], [0, 1, 1, 0], [], []>} : vector<16x1xf32>, vector<8x16xf32>, vector<1x8xf32> -> vector<1x8xf32>
    %cst_72 = arith.constant dense<0xFF800000> : vector<1xf32>
    %203 = vector.multi_reduction <maximumf>, %202, %cst_72 [1] : vector<1x8xf32> to vector<1xf32>
    %204 = vector.shape_cast %203 : vector<1xf32> to vector<1x1xf32>
    %205 = vector.broadcast %204 : vector<1x1xf32> to vector<1x8xf32>
    %206 = arith.subf %202, %205 : vector<1x8xf32>
    %207 = math.exp %206 : vector<1x8xf32>
    %cst_73 = arith.constant dense<0.000000e+00> : vector<1xf32>
    %208 = vector.multi_reduction <add>, %207, %cst_73 [1] : vector<1x8xf32> to vector<1xf32>
    %209 = vector.shape_cast %208 : vector<1xf32> to vector<1x1xf32>
    %210 = tpu.reciprocal %209 {approx = true} : vector<1x1xf32> -> vector<1x1xf32>
    %211 = vector.broadcast %210 : vector<1x1xf32> to vector<1x8xf32>
    %212 = arith.mulf %207, %211 : vector<1x8xf32>
    %cst_74 = arith.constant dense<0.000000e+00> : vector<1x8xf32>
    %213 = tpu.matmul %212, %135, %cst_74 {dimension_numbers = #tpu.dot_dimension_numbers<[1], [0], [0], [1], [0, 0, 1, 1], [], []>} : vector<1x8xf32>, vector<8x8xf32>, vector<1x8xf32> -> vector<1x8xf32>
    %cst_75 = arith.constant dense<0.000000e+00> : vector<1x8xf32>
    %214 = tpu.matmul %212, %155, %cst_75 {dimension_numbers = #tpu.dot_dimension_numbers<[1], [0], [0], [1], [0, 0, 1, 1], [], []>} : vector<1x8xf32>, vector<8x8xf32>, vector<1x8xf32> -> vector<1x8xf32>
    %cst_76 = arith.constant dense<0.000000e+00> : vector<1x8xf32>
    %215 = tpu.matmul %212, %175, %cst_76 {dimension_numbers = #tpu.dot_dimension_numbers<[1], [0], [0], [1], [0, 0, 1, 1], [], []>} : vector<1x8xf32>, vector<8x8xf32>, vector<1x8xf32> -> vector<1x8xf32>
    %cst_77 = arith.constant dense<0.000000e+00> : vector<1x8xf32>
    %216 = tpu.matmul %212, %195, %cst_77 {dimension_numbers = #tpu.dot_dimension_numbers<[1], [0], [0], [1], [0, 0, 1, 1], [], []>} : vector<1x8xf32>, vector<8x8xf32>, vector<1x8xf32> -> vector<1x8xf32>
    %217 = tpu.concatenate %213, %214, %215, %216 in 1 : vector<1x8xf32>, vector<1x8xf32>, vector<1x8xf32>, vector<1x8xf32> -> vector<1x32xf32>
    %218 = tpu.concatenate %116, %217 in 0 : vector<1x32xf32>, vector<1x32xf32> -> vector<2x32xf32>
    %c0_78 = arith.constant 0 : index
    %c0_79 = arith.constant 0 : index
    %219 = vector.load %arg7[%c0_78, %c0_79] : memref<2x32xf32, #tpu.memory_space<vmem>>, vector<2x32xf32>
    tpu.vector_store %arg7[%c0_78, %c0_79], %218 {strides = array<i32>} : memref<2x32xf32, #tpu.memory_space<vmem>>, vector<2x32xf32>,
    return
  }
}

</mosaic_0001>

<bundles_post_ra>
// kernel: tpu_custom_call.1
= control target key start
LH: loop header
LB: loop body
LE: loop exit
PB: predicated region body
PF: predicated region fallthrough
CT: control target
= control target key end

     0   :  { %v3425_v2 = vmov 0   ;;  %s3840_s0 = inlined_call_operand.vmem [shape: s32[16,1], index: 0, kind: input, shape index: {}]   ;;  %s3841_s1 = inlined_call_operand.vmem [shape: f32[50,32], index: 1, kind: input, shape index: {}]   ;;  %s3842_s2 = inlined_call_operand.vmem [shape: f32[32,96], index: 2, kind: input, shape index: {}]   ;;  %s3843_s3 = inlined_call_operand.vmem [shape: f32[1,96], index: 3, kind: input, shape index: {}]   ;;  %s3844_s4 = inlined_call_operand.vmem [shape: f32[32,16], index: 4, kind: input, shape index: {}]   ;;  %s3845_s5 = inlined_call_operand.vmem [shape: f32[1,16], index: 5, kind: input, shape index: {}]   ;;  %s3846_s6 = inlined_call_operand.vmem [shape: f32[16,1], index: 6, kind: input, shape index: {}]   ;;  %s3847_s7 = inlined_call_operand.hbm [shape: f32[2,32], index: 7, kind: output, shape index: {}]  }
   0x1   :  { %v27_v0 = vld [vmem:[%s3840_s0] sm:$0xff]  ;;  %3356 = vset.pattern.permute.xlu0 %v3425_v2  ;;  %v44_v3 = vld [vmem:[%s3841_s1 + $0x8] sm:$0xff]  ;;  %v45_v4 = vld [vmem:[%s3841_s1 + $0x10] sm:$0xff] }
   0x2   :  { %v43_v1 = vld [vmem:[%s3841_s1] sm:$0xff]  ;;  %v46_v5 = vld [vmem:[%s3841_s1 + $0x18] sm:$0xff]  ;;  %32 = vperm.xlu0 %3356, %v27_v0  }
   0x3   :  { %v3318_v6 = vpack.c.bf16 %v44_v3, %v43_v1  ;;  %v3322_v7 = vpack.c.bf16 %v46_v5, %v45_v4 }
   0x4   :  { %12 = vsyncpa [#allocation3], 0  ;;  %v28_v8 = vld [vmem:[%s3840_s0 + $0x8] sm:$0xff]  ;;  %v47_v9 = vld [vmem:[%s3841_s1 + $0x20] sm:$0xff]  ;;  %vm57_vm0 = vcmask 1041408   ;;  %v3426_v19 = vmov 0.0   ;;  %v29_v20 = vlaneseq }
   0x5   :  { %v48_v10 = vld [vmem:[%s3841_s1 + $0x28] sm:$0xff]  ;;  %3319 = vmatprep.subr.bf16.mxu0 %v3318_v6  ;;  %v136_v12 = vld [vmem:[%s3842_s2] sm:$0xff]  ;;  %v138_v14 = vld [vmem:[%s3842_s2 + $0x10] sm:$0xff]  ;;  %vm50_vm1 = vcmask 408576   ;;  %vm147_vm4 = vcmask 261120   ;;  %vm3427_vm5 = vmmov 0  }
   0x6   :  { %3321 = vmatpush3.bf16.msra.mxu0 %v3318_v6  ;;  %35 = vperm.xlu0 %3356, %v28_v8   ;;  %v3326_v11 = vpack.c.bf16 %v48_v10, %v47_v9  ;;  %v137_v13 = vld [vmem:[%s3842_s2 + $0x8] sm:$0xff]  ;;  %v139_v16 = vld [vmem:[%s3842_s2 + $0x18] sm:$0xff]  ;;  %v49_v18 = vld [vmem:[%s3841_s1 + $0x30] sm:$0x3]  ;;  %v30_v21 = vand.u32 127, %v29_v20  ;;  %s3428_s26 = smov 120  }
   0x7   :  { %3323 = vmatprep.subr.bf16.mxu0 %v3322_v7  ;;  %v3330_v15 = vpack.c.bf16 %v137_v13, %v136_v12  ;;  %v3334_v17 = vpack.c.bf16 %v139_v16, %v138_v14  ;;  %v2989_v28 = vld [vmem:[%s3843_s3] ss:$0 sm:$0xff]  ;;  %s3429_s27 = smov 96   ;;  %s3430_s28 = smov 88   ;;  %vm239_vm6 = vcmask 64512   ;;  %v3569_v54 = vld [vmem:[%s3844_s4 + $0x8] sm:$0xff] }
   0x8   :  { %s3431_s3 = smov 56   ;;  %s3432_s29 = smov 64   ;;  %v3584_v63 = vld [vmem:[%s3844_s4] sm:$0xff]  ;;  %vm1234_vm7 = vcmask 130048   ;;  %vm1311_vm8 = vcmask 57344   ;;  %vm1620_vm9 = vcmask 195584  }
   0x9   :  { %3331 = vmatprep.subr.bf16.mxu1 %v3330_v15  ;;  %s3433_s30 = smov 80   ;;  %s3434_s8 = smov 112   ;;  %vm2966_vm10 = vcmask 1040384   ;;  %vm2968_vm11 = vcmask 254976  }
   0xa   :  { %3325 = vmatpush3.bf16.msra.mxu0 %v3322_v7  ;;  %3333 = vmatpush3.bf16.msra.mxu1 %v3330_v15  ;;  %s3435_s13 = smov 72   ;;  %s3436_s14 = smov 104  }
   0xb   :  { %3327 = vmatprep.subr.bf16.mxu0 %v3326_v11  ;;  %3335 = vmatprep.subr.bf16.mxu1 %v3334_v17  ;;  %s3437_s15 = smov 48   ;;  %s3438_s18 = smov 40  }
   0xc   :  { %s3440_s24 = smov 16   ;;  %s3441_s25 = smov 24  }
   0xd   :  { %s3442_s1 = smov [#allocation2]  }
   0xe   :  { %3329 = vmatpush3.bf16.msra.mxu0 %v3326_v11  ;;  %3337 = vmatpush3.bf16.msra.mxu1 %v3334_v17  ;;  %s2976_s2 = sshll.u32 %s3442_s1, 4  ;;  %s2977_s2 = int_to_ptr.vmem [resolvable:$true] %s2976_s2 }
   0xf   :  { %3132 = vmatprep.subr.msk.mxu0 %vm57_vm0, %v49_v18  ;;  %3148 = vmatprep.subr.mxu1 %v3426_v19  ;;  %p3406_p1 = scmp.lt.s32.totalorder %s2977_s2, %s2977_s2 }
  0x12   :  { %3133 = vmatpush3.msk.msra.mxu0 %vm57_vm0, %v49_v18 }
  0x13   :  { %3158 = vmatprep.subr.mxu0 %v3426_v19 }
  0x81   :  { %v33_v22 = vpop.permute.xlu0 %32 }
  0x82   :  { %vm37_vm2 = vcmp.eq.s32.totalorder %v33_v22, %v30_v21 }
  0x83   :  { %v2984_v23 = vsel %vm37_vm2, 1.0, %v3426_v19 }
  0x84   :  { %3134 = vmatprep.mubr.msk.f32.mxu0 %vm50_vm1, %v2984_v23 }
  0x85   :  { %v36_v24 = vpop.permute.xlu0 %35 }
  0x86   :  { %vm38_vm3 = vcmp.eq.s32.totalorder %v36_v24, %v30_v21 }
  0x87   :  { %v2985_v25 = vsel %vm38_vm3, 1.0, %v3426_v19 }
  0x88   :  { %3135 = vmatmul.mubr.msk.f32.vlgmr.msra.gmra.mrb[0].mxu0 %vm50_vm1, %v2985_v25 }
  0x89   :  { %3160 = vmatprep.mubr.msk.f32.mxu0 %vm3427_vm5, %v3426_v19 }
 0x15b   :  { %v3136_v26 = vpop.f32.mrb[0].mxu0 }
 0x15c   :  { %v127_v27 = vpop.f32.mrb[1].mxu0 }
 0x15d   :  { %3145 = vmatprep.mubr.msk.f32.mxu1 %vm147_vm4, %v127_v27  ;;  %v3625_v27 = vld [vmem:[%s3844_s4 + $0x10] sm:$0xff] }
 0x15e   :  { %3146 = vmatmul.mubr.msk.f32.vlgmr.msra.gmra.mrb[0].mxu1 %vm147_vm4, %v3136_v26 }
 0x15f   :  { %3150 = vmatprep.mubr.msk.f32.mxu1 %vm3427_vm5, %v3426_v19 }
 0x231   :  { %v3147_v29 = vpop.f32.mrb[0].mxu1 }
 0x232   :  { %v3533_v30 = vadd.f32 %v3147_v29, %v2989_v28  ;;  %v220_v31 = vpop.f32.mrb[1].mxu1 }
 0x233   :  { %v3535_v32 = vadd.f32 %v2989_v28, %v220_v31 }
 0x235   :  { %402 = vrot.lane.b32.xlu0 %v3535_v32, %s3428_s26  ;;  %237 = vrot.lane.b32.xlu1 %v3535_v32, %s3429_s27 }
 0x239   :  { %404 = vrot.lane.b32.xlu1 %v3535_v32, %s3430_s28 }
 0x2a7   :  { %v238_v33 = vpop.permute.xlu1 %237  ;;  %v403_v35 = vpop.permute.xlu0 %402 }
 0x2a8   :  { %3149 = vmatpush3.xpose.msk.msra.mxu1 %vm239_vm6, %v238_v33 }
 0x2a9   :  { %3153 = vmatprep.subr.mxu1 %v3426_v19 }
 0x2ab   :  { %3151 = vmatmul.mubr.msk.f32.vlgmr.msra.gmra.mrb[2].mxu1 %vm239_vm6, %v3535_v32  ;;  %v405_v34 = vpop.permute.xlu1 %404 }
 0x2ac   :  { %3159 = vmatpush3.xpose.msk.msra.mxu0 %vm239_vm6, %v405_v34  ;;  %3155 = vmatprep.mubr.msk.f32.mxu1 %vm3427_vm5, %v3426_v19 }
 0x2ad   :  { %3168 = vmatprep.subr.mxu0 %v3426_v19 }
 0x2af   :  { %3161 = vmatmul.mubr.msk.f32.vlgmr.msra.gmra.mrb[2].mxu0 %vm239_vm6, %v403_v35 }
 0x2b0   :  { %3170 = vmatprep.mubr.msk.f32.mxu0 %vm3427_vm5, %v3426_v19  ;;  %3169 = vmatpush3.msra.mxu0 %v3569_v54 }
 0x2b1   :  { %3178 = vmatprep.subr.mxu0 %v3426_v19 }
 0x37e   :  { %v310_v36 = vpop.f32.mrb[2].mxu1 }
 0x37f   :  { %v314_v37 = vmul.f32 0.35355338, %v310_v36  ;;  %v3152_v38 = vpop.f32.mrb[3].mxu1 }
 0x381   :  { %v315_v39 = vsel %vm239_vm6, %v314_v37, -inf }
 0x382   :  { %316 = vmax.xlane.f32.xlu1 %v315_v39  ;;  %v476_v40 = vpop.f32.mrb[2].mxu0 }
 0x383   :  { %v480_v41 = vmul.f32 0.35355338, %v476_v40  ;;  %v3162_v42 = vpop.f32.mrb[3].mxu0 }
 0x385   :  { %v481_v43 = vsel %vm239_vm6, %v480_v41, -inf }
 0x386   :  { %482 = vmax.xlane.f32.xlu0 %v481_v43 }
 0x40f   :  { %v317_v44 = vpop.xlane.xlu1 %316 }
 0x410   :  { %v318_v45 = vsub.f32 %v314_v37, %v317_v44 }
 0x412   :  { %v319_v46 = vmul.f32 1.442695, %v318_v45  ;;  %v234_v45 = vld [vmem:[%s3846_s6] sm:$0xff] }
 0x413   :  { %v483_v47 = vpop.xlane.xlu0 %482 }
 0x414   :  { %3357 = vpow2.f32 %v319_v46  ;;  %v484_v48 = vsub.f32 %v480_v41, %v483_v47  ;;  %v3649_v46 = vld [vmem:[%s3844_s4 + $0x18] sm:$0xff] }
 0x416   :  { %v485_v49 = vmul.f32 1.442695, %v484_v48 }
 0x418   :  { %3359 = vpow2.f32 %v485_v49 }
 0x41e   :  { %v3358_v50 = vpop.eup %3357 }
 0x41f   :  { %v321_v51 = vsel %vm239_vm6, %v3358_v50, 0.0 }
 0x420   :  { %322 = vadd.xlane.f32.xlu0 %v321_v51 }
 0x422   :  { %v3360_v52 = vpop.eup %3359 }
 0x423   :  { %v487_v53 = vsel %vm239_vm6, %v3360_v52, 0.0 }
 0x424   :  { %488 = vadd.xlane.f32.xlu1 %v487_v53 }
 0x435   :  { %492 = vrot.lane.b32.xlu1 %v3535_v32, %s3431_s3 }
 0x436   :  { %326 = vrot.lane.b32.xlu0 %v3535_v32, %s3432_s29 }
 0x439   :  { %716 = vrot.lane.b32.xlu1 %v3535_v32, %s3433_s30 }
 0x43a   :  { %714 = vrot.lane.b32.xlu0 %v3535_v32, %s3434_s8 }
 0x4ad   :  { %v323_v55 = vpop.xlane.xlu0 %322 }
 0x4ae   :  { %3361 = vrcp.f32 %v323_v55 }
 0x4b1   :  { %v327_v56 = vpop.permute.xlu0 %326  ;;  %v489_v57 = vpop.xlane.xlu1 %488 }
 0x4b2   :  { %3363 = vrcp.f32 %v489_v57  ;;  %3154 = vmatpush3.msra.mxu1 %v327_v56 }
 0x4b3   :  { %3163 = vmatprep.subr.mxu1 %v3426_v19 }
 0x4b5   :  { %v493_v60 = vpop.permute.xlu1 %492  ;;  %v715_v5 = vpop.permute.xlu0 %714 }
 0x4b8   :  { %v3362_v58 = vpop.eup %3361 }
 0x4b9   :  { %v325_v59 = vmul.f32 %v3362_v58, %v3358_v50  ;;  %v717_v3 = vpop.permute.xlu1 %716 }
 0x4bb   :  { %3156 = vmatmul.mubr.msk.f32.vlgmr.msra.gmra.mrb[4].mxu1 %vm239_vm6, %v325_v59 }
 0x4bc   :  { %v3364_v61 = vpop.eup %3363  ;;  %3164 = vmatpush3.msra.mxu1 %v493_v60  ;;  %3165 = vmatprep.mubr.msk.f32.mxu1 %vm3427_vm5, %v3426_v19 }
 0x4bd   :  { %v491_v62 = vmul.f32 %v3364_v61, %v3360_v52  ;;  %3173 = vmatprep.subr.mxu1 %v3426_v19  ;;  %v3666_v52 = vld [vmem:[%s3845_s5] ss:$0 sm:$0xff]  ;;  %s3439_s5 = smov 8  }
 0x4bf   :  { %3166 = vmatmul.mubr.msk.f32.vlgmr.msra.gmra.mrb[6].mxu1 %vm239_vm6, %v491_v62 }
 0x4c0   :  { %3175 = vmatprep.mubr.msk.f32.mxu1 %vm3427_vm5, %v3426_v19  ;;  %3174 = vmatpush3.msra.mxu1 %v3584_v63 }
 0x4c1   :  { %3183 = vmatprep.subr.mxu1 %v3426_v19 }
 0x58e   :  { %v3588_v0 = vpop.f32.mrb[4].mxu1 }
 0x58f   :  { %v3157_v1 = vpop.f32.mrb[5].mxu1  ;;  %3176 = vmatmul.mubr.msk.f32.vlgmr.msra.gmra.mrb[8].mxu1 %vm239_vm6, %v3588_v0 }
 0x590   :  { %3185 = vmatprep.mubr.msk.f32.mxu1 %vm3427_vm5, %v3426_v19 }
 0x592   :  { %v3594_v2 = vpop.f32.mrb[6].mxu1 }
 0x593   :  { %v3167_v4 = vpop.f32.mrb[7].mxu1  ;;  %3171 = vmatmul.mubr.msk.f32.vlgmr.msra.gmra.mrb[4].mxu0 %vm239_vm6, %v3594_v2 }
 0x594   :  { %3179 = vmatpush3.xpose.msk.msra.mxu0 %vm239_vm6, %v717_v3  ;;  %3180 = vmatprep.mubr.msk.f32.mxu0 %vm3427_vm5, %v3426_v19 }
 0x595   :  { %3188 = vmatprep.subr.mxu0 %v3426_v19 }
 0x597   :  { %3181 = vmatmul.mubr.msk.f32.vlgmr.msra.gmra.mrb[6].mxu0 %vm239_vm6, %v715_v5 }
 0x598   :  { %3190 = vmatprep.mubr.msk.f32.mxu0 %vm3427_vm5, %v3426_v19  ;;  %3189 = vmatpush3.msra.mxu0 %v3625_v27 }
 0x599   :  { %3198 = vmatprep.subr.mxu0 %v3426_v19 }
 0x662   :  { %v710_v6 = vpop.f32.mrb[8].mxu1 }
 0x663   :  { %v3177_v7 = vpop.f32.mrb[9].mxu1 }
 0x666   :  { %v637_v8 = vpop.f32.mrb[4].mxu0 }
 0x667   :  { %v711_v9 = vadd.f32 %v710_v6, %v637_v8  ;;  %v3172_v10 = vpop.f32.mrb[5].mxu0 }
 0x66a   :  { %v788_v11 = vpop.f32.mrb[6].mxu0 }
 0x66b   :  { %v792_v12 = vmul.f32 0.35355338, %v788_v11  ;;  %v3182_v13 = vpop.f32.mrb[7].mxu0 }
 0x66d   :  { %v793_v14 = vsel %vm239_vm6, %v792_v12, -inf }
 0x66e   :  { %794 = vmax.xlane.f32.xlu1 %v793_v14 }
 0x67f   :  { %956 = vrot.lane.b32.xlu1 %v3535_v32, %s3435_s13 }
 0x683   :  { %954 = vrot.lane.b32.xlu1 %v3535_v32, %s3436_s14 }
 0x6fb   :  { %v795_v15 = vpop.xlane.xlu1 %794 }
 0x6fc   :  { %v796_v16 = vsub.f32 %v792_v12, %v795_v15 }
 0x6fe   :  { %v797_v17 = vmul.f32 1.442695, %v796_v16 }
 0x6ff   :  { %v957_v24 = vpop.permute.xlu1 %956 }
 0x700   :  { %3365 = vpow2.f32 %v797_v17 }
 0x703   :  { %v955_v26 = vpop.permute.xlu1 %954 }
 0x70a   :  { %v3366_v18 = vpop.eup %3365 }
 0x70b   :  { %v799_v20 = vsel %vm239_vm6, %v3366_v18, 0.0 }
 0x70c   :  { %800 = vadd.xlane.f32.xlu0 %v799_v20 }
 0x722   :  { %804 = vrot.lane.b32.xlu0 %v3535_v32, %s3437_s15 }
 0x799   :  { %v801_v21 = vpop.xlane.xlu0 %800 }
 0x79a   :  { %3367 = vrcp.f32 %v801_v21 }
 0x79d   :  { %v805_v22 = vpop.permute.xlu0 %804 }
 0x79e   :  { %3184 = vmatpush3.msra.mxu1 %v805_v22 }
 0x79f   :  { %3193 = vmatprep.subr.mxu1 %v3426_v19 }
 0x7a4   :  { %v3368_v23 = vpop.eup %3367 }
 0x7a5   :  { %v803_v25 = vmul.f32 %v3368_v23, %v3366_v18 }
 0x7a7   :  { %3186 = vmatmul.mubr.msk.f32.vlgmr.msra.gmra.mrb[10].mxu1 %vm239_vm6, %v803_v25 }
 0x7a8   :  { %3194 = vmatpush3.xpose.msk.msra.mxu1 %vm239_vm6, %v957_v24  ;;  %3195 = vmatprep.mubr.msk.f32.mxu1 %vm3427_vm5, %v3426_v19 }
 0x7a9   :  { %3203 = vmatprep.subr.mxu1 %v3426_v19 }
 0x7ab   :  { %3196 = vmatmul.mubr.msk.f32.vlgmr.msra.gmra.mrb[12].mxu1 %vm239_vm6, %v955_v26 }
 0x7ac   :  { %3205 = vmatprep.mubr.msk.f32.mxu1 %vm3427_vm5, %v3426_v19  ;;  %3204 = vmatpush3.msra.mxu1 %v3649_v46 }
 0x7ad   :  { %3213 = vmatprep.subr.mxu1 %v3426_v19 }
 0x87a   :  { %v3629_v28 = vpop.f32.mrb[10].mxu1 }
 0x87b   :  { %v3187_v29 = vpop.f32.mrb[11].mxu1  ;;  %3191 = vmatmul.mubr.msk.f32.vlgmr.msra.gmra.mrb[8].mxu0 %vm239_vm6, %v3629_v28 }
 0x87c   :  { %3200 = vmatprep.mubr.msk.f32.mxu0 %vm3427_vm5, %v3426_v19 }
 0x87e   :  { %v1028_v31 = vpop.f32.mrb[12].mxu1 }
 0x87f   :  { %v1032_v33 = vmul.f32 0.35355338, %v1028_v31  ;;  %v3197_v34 = vpop.f32.mrb[13].mxu1 }
 0x881   :  { %v1033_v35 = vsel %vm239_vm6, %v1032_v33, -inf }
 0x882   :  { %1034 = vmax.xlane.f32.xlu0 %v1033_v35 }
 0x898   :  { %1044 = vrot.lane.b32.xlu0 %v3535_v32, %s3438_s18  ;;  %v235_v32 = vld [vmem:[%s3846_s6 + $0x8] sm:$0xff] }
 0x90f   :  { %v1035_v36 = vpop.xlane.xlu0 %1034 }
 0x910   :  { %v1036_v37 = vsub.f32 %v1032_v33, %v1035_v36 }
 0x912   :  { %v1037_v38 = vmul.f32 1.442695, %v1036_v37 }
 0x913   :  { %v1045_v39 = vpop.permute.xlu0 %1044 }
 0x914   :  { %3369 = vpow2.f32 %v1037_v38  ;;  %3199 = vmatpush3.msra.mxu0 %v1045_v39 }
 0x915   :  { %3208 = vmatprep.subr.mxu0 %v3426_v19 }
 0x91e   :  { %v3370_v40 = vpop.eup %3369 }
 0x91f   :  { %v1039_v41 = vsel %vm239_vm6, %v3370_v40, 0.0 }
 0x920   :  { %1040 = vadd.xlane.f32.xlu1 %v1039_v41 }
 0x94e   :  { %v949_v42 = vpop.f32.mrb[8].mxu0 }
 0x94f   :  { %v953_v43 = vadd.f32 %v949_v42, %v711_v9  ;;  %v3192_v44 = vpop.f32.mrb[9].mxu0 }
 0x953   :  { %1202 = vxpose.xlu1.b32.start [1/2] (short) (narrow) %v234_v45, 8 }
 0x957   :  { %1203 = vxpose.xlu1.b32.end [2/2] (short) (narrow) %v235_v32, 8 }
 0x975   :  { %1789 = vrot.lane.b32.xlu1 %v3533_v30, %s3430_s28 }
 0x9ad   :  { %v1041_v47 = vpop.xlane.xlu1 %1040 }
 0x9ae   :  { %3371 = vrcp.f32 %v1041_v47 }
 0x9b8   :  { %v3372_v48 = vpop.eup %3371 }
 0x9b9   :  { %v1043_v49 = vmul.f32 %v3372_v48, %v3370_v40 }
 0x9bb   :  { %3201 = vmatmul.mubr.msk.f32.vlgmr.msra.gmra.mrb[10].mxu0 %vm239_vm6, %v1043_v49 }
 0x9bc   :  { %3210 = vmatprep.mubr.msk.f32.mxu0 %vm3427_vm5, %v3426_v19 }
 0x9d3   :  { %v3671_v59 = vpop.trf.xlu1 }
 0x9e7   :  { %v1790_v9 = vpop.permute.xlu1 %1789 }
 0xa8e   :  { %v1116_v50 = vpop.f32.mrb[10].mxu0 }
 0xa8f   :  { %v3202_v51 = vpop.f32.mrb[11].mxu0  ;;  %3206 = vmatmul.mubr.msk.f32.vlgmr.msra.gmra.mrb[14].mxu1 %vm239_vm6, %v1116_v50 }
 0xa90   :  { %3214 = vmatpush3.msra.mxu1 %v3588_v0  ;;  %3215 = vmatprep.mubr.msk.f32.mxu1 %vm3427_vm5, %v3426_v19 }
 0xa91   :  { %3223 = vmatprep.subr.mxu1 %v3426_v19 }
 0xb62   :  { %v1189_v53 = vpop.f32.mrb[14].mxu1 }
 0xb63   :  { %v1193_v55 = vadd.f32 %v1189_v53, %v953_v43  ;;  %v3207_v56 = vpop.f32.mrb[15].mxu1 }
 0xb65   :  { %v1200_v57 = vadd.f32 %v3666_v52, %v1193_v55 }
 0xb67   :  { %3373 = vtanh.f32 %v1200_v57 }
 0xb71   :  { %v3374_v58 = vpop.eup %3373 }
 0xb72   :  { %3209 = vmatpush3.xpose.msk.msra.mxu0 %vm1234_vm7, %v3374_v58 }
 0xb73   :  { %3218 = vmatprep.subr.mxu0 %v3426_v19 }
 0xb75   :  { %3211 = vmatmul.mubr.msk.f32.vlgmr.msra.gmra.mrb[12].mxu0 %vm1234_vm7, %v3671_v59 }
 0xb76   :  { %3219 = vmatpush3.msra.mxu0 %v3594_v2  ;;  %3220 = vmatprep.mubr.msk.f32.mxu0 %vm3427_vm5, %v3426_v19 }
 0xb77   :  { %3228 = vmatprep.subr.mxu0 %v3426_v19 }
 0xc48   :  { %v1307_v60 = vpop.f32.mrb[12].mxu0 }
 0xc49   :  { %v3212_v61 = vpop.f32.mrb[13].mxu0  ;;  %v1312_v62 = vsel %vm1311_vm8, %v1307_v60, -inf }
 0xc4a   :  { %1313 = vmax.xlane.f32.xlu0 %v1312_v62 }
 0xcd7   :  { %v1314_v0 = vpop.xlane.xlu0 %1313 }
 0xcd8   :  { %v1315_v1 = vsub.f32 %v1307_v60, %v1314_v0 }
 0xcda   :  { %v1316_v3 = vmul.f32 1.442695, %v1315_v1 }
 0xcdc   :  { %3375 = vpow2.f32 %v1316_v3 }
 0xce6   :  { %v3376_v4 = vpop.eup %3375 }
 0xce7   :  { %v1318_v5 = vsel %vm1311_vm8, %v3376_v4, 0.0 }
 0xce8   :  { %1319 = vadd.xlane.f32.xlu0 %v1318_v5 }
 0xcfe   :  { %1623 = vrot.lane.b32.xlu0 %v3533_v30, %s3429_s27 }
 0xd02   :  { %1787 = vrot.lane.b32.xlu0 %v3533_v30, %s3428_s26  ;;  %s3401_s26 = scalar_lea.vmem %s2977_s2, 32 }
 0xd03   :  { %p3402_p0 = scmp.ne.s32.totalorder %s2977_s2, %s3401_s26  ;;  %p3407_p2 = scmp.lt.s32.totalorder %s3401_s26, %s3401_s26 }
 0xd05   :  { %p3408_p3 = por %p3407_p2, %p3406_p1 }
 0xd07   :  { %p3409_p4 = pnand %p3408_p3, %p3402_p0 }
 0xd75   :  { %v1320_v2 = vpop.xlane.xlu0 %1319 }
 0xd76   :  { %3377 = vrcp.f32 %v1320_v2 }
 0xd79   :  { %v1624_v8 = vpop.permute.xlu0 %1623 }
 0xd7d   :  { %v1788_v10 = vpop.permute.xlu0 %1787 }
 0xd80   :  { %v3378_v6 = vpop.eup %3377 }
 0xd81   :  { %v1322_v7 = vmul.f32 %v3378_v6, %v3376_v4 }
 0xd83   :  { %3216 = vmatmul.mubr.msk.f32.vlgmr.msra.gmra.mrb[16].mxu1 %vm239_vm6, %v1322_v7  ;;  %3221 = vmatmul.mubr.msk.f32.vlgmr.msra.gmra.mrb[14].mxu0 %vm239_vm6, %v1322_v7 }
 0xd84   :  { %3224 = vmatpush3.msra.mxu1 %v3629_v28  ;;  %3229 = vmatpush3.msra.mxu0 %v1116_v50 }
 0xd85   :  { %3225 = vmatprep.mubr.msk.f32.mxu1 %vm3427_vm5, %v3426_v19  ;;  %3230 = vmatprep.mubr.msk.f32.mxu0 %vm3427_vm5, %v3426_v19 }
 0xd86   :  { %3233 = vmatprep.subr.mxu1 %v3426_v19  ;;  %3238 = vmatprep.subr.mxu0 %v3426_v19 }
 0xd87   :  { %3226 = vmatmul.mubr.msk.f32.vlgmr.msra.gmra.mrb[18].mxu1 %vm239_vm6, %v1322_v7  ;;  %3231 = vmatmul.mubr.msk.f32.vlgmr.msra.gmra.mrb[16].mxu0 %vm239_vm6, %v1322_v7 }
 0xd88   :  { %3235 = vmatprep.mubr.msk.f32.mxu1 %vm3427_vm5, %v3426_v19  ;;  %3240 = vmatprep.mubr.msk.f32.mxu0 %vm3427_vm5, %v3426_v19 }
 0xd8b   :  { %3234 = vmatpush3.xpose.msk.msra.mxu1 %vm239_vm6, %v1624_v8 }
 0xd8c   :  { %3243 = vmatprep.subr.mxu1 %v3426_v19 }
 0xd8e   :  { %3236 = vmatmul.mubr.msk.f32.vlgmr.msra.gmra.mrb[20].mxu1 %vm239_vm6, %v3533_v30 }
 0xd8f   :  { %3244 = vmatpush3.xpose.msk.msra.mxu1 %vm239_vm6, %v1790_v9  ;;  %3245 = vmatprep.mubr.msk.f32.mxu1 %vm3427_vm5, %v3426_v19 }
 0xd90   :  { %3253 = vmatprep.subr.mxu1 %v3426_v19 }
 0xd92   :  { %3246 = vmatmul.mubr.msk.f32.vlgmr.msra.gmra.mrb[22].mxu1 %vm239_vm6, %v1788_v10 }
 0xd93   :  { %3254 = vmatpush3.msra.mxu1 %v3569_v54  ;;  %3255 = vmatprep.mubr.msk.f32.mxu1 %vm3427_vm5, %v3426_v19 }
 0xd94   :  { %3263 = vmatprep.subr.mxu1 %v3426_v19 }
 0xe56   :  { %v3713_v11 = vpop.f32.mrb[16].mxu1  ;;  %v3715_v12 = vpop.f32.mrb[14].mxu0 }
 0xe57   :  { %v3217_v13 = vpop.f32.mrb[17].mxu1  ;;  %v3222_v14 = vpop.f32.mrb[15].mxu0 }
 0xe5a   :  { %v3717_v15 = vpop.f32.mrb[18].mxu1  ;;  %v3719_v16 = vpop.f32.mrb[16].mxu0 }
 0xe5b   :  { %v3227_v17 = vpop.f32.mrb[19].mxu1  ;;  %v3232_v18 = vpop.f32.mrb[17].mxu0 }
 0xe61   :  { %v1695_v20 = vpop.f32.mrb[20].mxu1 }
 0xe62   :  { %v1699_v21 = vmul.f32 0.35355338, %v1695_v20  ;;  %v3237_v54 = vpop.f32.mrb[21].mxu1 }
 0xe64   :  { %v1700_v22 = vsel %vm239_vm6, %v1699_v21, -inf }
 0xe65   :  { %1701 = vmax.xlane.f32.xlu0 %v1700_v22  ;;  %v1861_v23 = vpop.f32.mrb[22].mxu1 }
 0xe66   :  { %v1865_v24 = vmul.f32 0.35355338, %v1861_v23  ;;  %v3247_v25 = vpop.f32.mrb[23].mxu1 }
 0xe68   :  { %v1866_v26 = vsel %vm239_vm6, %v1865_v24, -inf }
 0xe69   :  { %1867 = vmax.xlane.f32.xlu1 %v1866_v26 }
 0xe7a   :  { %1877 = vrot.lane.b32.xlu1 %v3533_v30, %s3431_s3 }
 0xe7e   :  { %2101 = vrot.lane.b32.xlu1 %v3533_v30, %s3433_s30 }
 0xef2   :  { %v1702_v28 = vpop.xlane.xlu0 %1701 }
 0xef3   :  { %v1703_v29 = vsub.f32 %v1699_v21, %v1702_v28 }
 0xef5   :  { %v1704_v31 = vmul.f32 1.442695, %v1703_v29 }
 0xef6   :  { %v1868_v33 = vpop.xlane.xlu1 %1867 }
 0xef7   :  { %3379 = vpow2.f32 %v1704_v31  ;;  %v1869_v34 = vsub.f32 %v1865_v24, %v1868_v33 }
 0xef9   :  { %v1870_v35 = vmul.f32 1.442695, %v1869_v34 }
 0xefa   :  { %v1878_v45 = vpop.permute.xlu1 %1877 }
 0xefb   :  { %3381 = vpow2.f32 %v1870_v35 }
 0xefe   :  { %v2102_v51 = vpop.permute.xlu1 %2101 }
 0xf01   :  { %v3380_v36 = vpop.eup %3379 }
 0xf02   :  { %v1706_v37 = vsel %vm239_vm6, %v3380_v36, 0.0 }
 0xf03   :  { %1707 = vadd.xlane.f32.xlu0 %v1706_v37 }
 0xf05   :  { %v3382_v38 = vpop.eup %3381 }
 0xf06   :  { %v1872_v39 = vsel %vm239_vm6, %v3382_v38, 0.0 }
 0xf07   :  { %1873 = vadd.xlane.f32.xlu0 %v1872_v39 }
 0xf1d   :  { %1711 = vrot.lane.b32.xlu0 %v3533_v30, %s3432_s29 }
 0xf21   :  { %2099 = vrot.lane.b32.xlu0 %v3533_v30, %s3434_s8 }
 0xf90   :  { %v1708_v40 = vpop.xlane.xlu0 %1707 }
 0xf91   :  { %3383 = vrcp.f32 %v1708_v40 }
 0xf94   :  { %v1874_v41 = vpop.xlane.xlu0 %1873 }
 0xf95   :  { %3385 = vrcp.f32 %v1874_v41 }
 0xf98   :  { %v1712_v42 = vpop.permute.xlu0 %1711 }
 0xf99   :  { %3239 = vmatpush3.msra.mxu0 %v1712_v42 }
 0xf9a   :  { %3248 = vmatprep.subr.mxu0 %v3426_v19 }
 0xf9b   :  { %v3384_v43 = vpop.eup %3383 }
 0xf9c   :  { %v1710_v44 = vmul.f32 %v3384_v43, %v3380_v36 }
 0xf9e   :  { %3241 = vmatmul.mubr.msk.f32.vlgmr.msra.gmra.mrb[18].mxu0 %vm239_vm6, %v1710_v44 }
 0xf9f   :  { %v3386_v32 = vpop.eup %3385  ;;  %3249 = vmatpush3.msra.mxu0 %v1878_v45  ;;  %3250 = vmatprep.mubr.msk.f32.mxu0 %vm3427_vm5, %v3426_v19 }
 0xfa0   :  { %v1876_v47 = vmul.f32 %v3386_v32, %v3382_v38  ;;  %3258 = vmatprep.subr.mxu0 %v3426_v19 }
 0xfa2   :  { %3251 = vmatmul.mubr.msk.f32.vlgmr.msra.gmra.mrb[20].mxu0 %vm239_vm6, %v1876_v47 }
 0xfa3   :  { %3259 = vmatpush3.msra.mxu0 %v3584_v63  ;;  %3260 = vmatprep.mubr.msk.f32.mxu0 %vm3427_vm5, %v3426_v19  ;;  %v2100_v63 = vpop.permute.xlu0 %2099 }
 0xfa4   :  { %3268 = vmatprep.subr.mxu0 %v3426_v19 }
0x1071   :  { %v3743_v48 = vpop.f32.mrb[18].mxu0 }
0x1072   :  { %v3242_v49 = vpop.f32.mrb[19].mxu0  ;;  %3261 = vmatmul.mubr.msk.f32.vlgmr.msra.gmra.mrb[22].mxu0 %vm239_vm6, %v3743_v48 }
0x1073   :  { %3270 = vmatprep.mubr.msk.f32.mxu0 %vm3427_vm5, %v3426_v19 }
0x1075   :  { %v3749_v50 = vpop.f32.mrb[20].mxu0 }
0x1076   :  { %v3252_v53 = vpop.f32.mrb[21].mxu0  ;;  %3256 = vmatmul.mubr.msk.f32.vlgmr.msra.gmra.mrb[24].mxu1 %vm239_vm6, %v3749_v50 }
0x1077   :  { %3264 = vmatpush3.xpose.msk.msra.mxu1 %vm239_vm6, %v2102_v51  ;;  %3265 = vmatprep.mubr.msk.f32.mxu1 %vm3427_vm5, %v3426_v19 }
0x1078   :  { %3273 = vmatprep.subr.mxu1 %v3426_v19 }
0x107a   :  { %3266 = vmatmul.mubr.msk.f32.vlgmr.msra.gmra.mrb[26].mxu1 %vm239_vm6, %v2100_v63 }
0x107b   :  { %3274 = vmatpush3.msra.mxu1 %v3625_v27  ;;  %3275 = vmatprep.mubr.msk.f32.mxu1 %vm3427_vm5, %v3426_v19 }
0x107c   :  { %3283 = vmatprep.subr.mxu1 %v3426_v19 }
0x1145   :  { %v2095_v55 = vpop.f32.mrb[22].mxu0 }
0x1146   :  { %v3262_v56 = vpop.f32.mrb[23].mxu0 }
0x1149   :  { %v2022_v57 = vpop.f32.mrb[24].mxu1 }
0x114a   :  { %v2096_v58 = vadd.f32 %v2095_v55, %v2022_v57  ;;  %v3257_v60 = vpop.f32.mrb[25].mxu1 }
0x114d   :  { %v2173_v61 = vpop.f32.mrb[26].mxu1 }
0x114e   :  { %v2177_v62 = vmul.f32 0.35355338, %v2173_v61  ;;  %v3267_v0 = vpop.f32.mrb[27].mxu1 }
0x1150   :  { %v2178_v1 = vsel %vm239_vm6, %v2177_v62, -inf }
0x1151   :  { %2179 = vmax.xlane.f32.xlu1 %v2178_v1 }
0x1162   :  { %2341 = vrot.lane.b32.xlu1 %v3533_v30, %s3435_s13 }
0x1166   :  { %2339 = vrot.lane.b32.xlu1 %v3533_v30, %s3436_s14 }
0x11de   :  { %v2180_v27 = vpop.xlane.xlu1 %2179 }
0x11df   :  { %v2181_v3 = vsub.f32 %v2177_v62, %v2180_v27 }
0x11e1   :  { %v2182_v4 = vmul.f32 1.442695, %v2181_v3 }
0x11e2   :  { %v2342_v9 = vpop.permute.xlu1 %2341 }
0x11e3   :  { %3387 = vpow2.f32 %v2182_v4 }
0x11e6   :  { %v2340_v13 = vpop.permute.xlu1 %2339 }
0x11ed   :  { %v3388_v5 = vpop.eup %3387 }
0x11ee   :  { %v2184_v2 = vsel %vm239_vm6, %v3388_v5, 0.0 }
0x11ef   :  { %2185 = vadd.xlane.f32.xlu0 %v2184_v2 }
0x1205   :  { %2189 = vrot.lane.b32.xlu0 %v3533_v30, %s3437_s15 }
0x127c   :  { %v2186_v6 = vpop.xlane.xlu0 %2185 }
0x127d   :  { %3389 = vrcp.f32 %v2186_v6 }
0x1280   :  { %v2190_v7 = vpop.permute.xlu0 %2189 }
0x1281   :  { %3269 = vmatpush3.msra.mxu0 %v2190_v7 }
0x1282   :  { %3278 = vmatprep.subr.mxu0 %v3426_v19 }
0x1287   :  { %v3390_v8 = vpop.eup %3389 }
0x1288   :  { %v2188_v10 = vmul.f32 %v3390_v8, %v3388_v5 }
0x128a   :  { %3271 = vmatmul.mubr.msk.f32.vlgmr.msra.gmra.mrb[24].mxu0 %vm239_vm6, %v2188_v10 }
0x128b   :  { %3279 = vmatpush3.xpose.msk.msra.mxu0 %vm239_vm6, %v2342_v9  ;;  %3280 = vmatprep.mubr.msk.f32.mxu0 %vm3427_vm5, %v3426_v19 }
0x128c   :  { %3288 = vmatprep.subr.mxu0 %v3426_v19 }
0x128e   :  { %3281 = vmatmul.mubr.msk.f32.vlgmr.msra.gmra.mrb[26].mxu0 %vm239_vm6, %v2340_v13 }
0x128f   :  { %3289 = vmatpush3.msra.mxu0 %v3649_v46  ;;  %3290 = vmatprep.mubr.msk.f32.mxu0 %vm3427_vm5, %v3426_v19 }
0x1290   :  { %3298 = vmatprep.subr.mxu0 %v3426_v19 }
0x135d   :  { %v3781_v14 = vpop.f32.mrb[24].mxu0 }
0x135e   :  { %v3272_v17 = vpop.f32.mrb[25].mxu0  ;;  %3276 = vmatmul.mubr.msk.f32.vlgmr.msra.gmra.mrb[28].mxu1 %vm239_vm6, %v3781_v14 }
0x135f   :  { %3285 = vmatprep.mubr.msk.f32.mxu1 %vm3427_vm5, %v3426_v19 }
0x1361   :  { %v2413_v18 = vpop.f32.mrb[26].mxu0 }
0x1362   :  { %v2417_v20 = vmul.f32 0.35355338, %v2413_v18  ;;  %v3282_v21 = vpop.f32.mrb[27].mxu0 }
0x1364   :  { %v2418_v54 = vsel %vm239_vm6, %v2417_v20, -inf }
0x1365   :  { %2419 = vmax.xlane.f32.xlu0 %v2418_v54 }
0x137b   :  { %2429 = vrot.lane.b32.xlu0 %v3533_v30, %s3438_s18 }
0x13f2   :  { %v2420_v46 = vpop.xlane.xlu0 %2419 }
0x13f3   :  { %v2421_v22 = vsub.f32 %v2417_v20, %v2420_v46 }
0x13f5   :  { %v2422_v23 = vmul.f32 1.442695, %v2421_v22 }
0x13f6   :  { %v2430_v24 = vpop.permute.xlu0 %2429 }
0x13f7   :  { %3391 = vpow2.f32 %v2422_v23  ;;  %3284 = vmatpush3.msra.mxu1 %v2430_v24 }
0x13f8   :  { %3293 = vmatprep.subr.mxu1 %v3426_v19 }
0x1401   :  { %v3392_v25 = vpop.eup %3391 }
0x1402   :  { %v2424_v26 = vsel %vm239_vm6, %v3392_v25, 0.0 }
0x1403   :  { %2425 = vadd.xlane.f32.xlu1 %v2424_v26 }
0x1431   :  { %v2334_v28 = vpop.f32.mrb[28].mxu1 }
0x1432   :  { %v2338_v29 = vadd.f32 %v2334_v28, %v2096_v58  ;;  %v3277_v31 = vpop.f32.mrb[29].mxu1 }
0x1490   :  { %v2426_v33 = vpop.xlane.xlu1 %2425 }
0x1491   :  { %3393 = vrcp.f32 %v2426_v33 }
0x149b   :  { %v3394_v34 = vpop.eup %3393 }
0x149c   :  { %v2428_v35 = vmul.f32 %v3394_v34, %v3392_v25 }
0x149e   :  { %3286 = vmatmul.mubr.msk.f32.vlgmr.msra.gmra.mrb[30].mxu1 %vm239_vm6, %v2428_v35 }
0x149f   :  { %3295 = vmatprep.mubr.msk.f32.mxu1 %vm3427_vm5, %v3426_v19 }
0x1571   :  { %v2501_v30 = vpop.f32.mrb[30].mxu1 }
0x1572   :  { %v3287_v36 = vpop.f32.mrb[31].mxu1  ;;  %3291 = vmatmul.mubr.msk.f32.vlgmr.msra.gmra.mrb[28].mxu0 %vm239_vm6, %v2501_v30 }
0x1573   :  { %3299 = vmatpush3.msra.mxu0 %v3743_v48  ;;  %3300 = vmatprep.mubr.msk.f32.mxu0 %vm3427_vm5, %v3426_v19 }
0x1574   :  { %3308 = vmatprep.subr.mxu0 %v3426_v19 }
0x1645   :  { %v2574_v37 = vpop.f32.mrb[28].mxu0 }
0x1646   :  { %v2578_v38 = vadd.f32 %v2574_v37, %v2338_v29  ;;  %v3292_v39 = vpop.f32.mrb[29].mxu0 }
0x1648   :  { %v2579_v40 = vadd.f32 %v3666_v52, %v2578_v38 }
0x164a   :  { %3395 = vtanh.f32 %v2579_v40 }
0x1654   :  { %v3396_v41 = vpop.eup %3395 }
0x1655   :  { %3294 = vmatpush3.xpose.msk.msra.mxu1 %vm1234_vm7, %v3396_v41 }
0x1656   :  { %3303 = vmatprep.subr.mxu1 %v3426_v19 }
0x1658   :  { %3296 = vmatmul.mubr.msk.f32.vlgmr.msra.gmra.mrb[32].mxu1 %vm1234_vm7, %v3671_v59 }
0x1659   :  { %3304 = vmatpush3.msra.mxu1 %v3749_v50  ;;  %3305 = vmatprep.mubr.msk.f32.mxu1 %vm3427_vm5, %v3426_v19 }
0x165a   :  { %3313 = vmatprep.subr.mxu1 %v3426_v19 }
0x172b   :  { %v2650_v42 = vpop.f32.mrb[32].mxu1 }
0x172c   :  { %v3297_v43 = vpop.f32.mrb[33].mxu1  ;;  %v2654_v52 = vsel %vm1311_vm8, %v2650_v42, -inf }
0x172d   :  { %2655 = vmax.xlane.f32.xlu1 %v2654_v52 }
0x17ba   :  { %v2656_v44 = vpop.xlane.xlu1 %2655 }
0x17bb   :  { %v2657_v45 = vsub.f32 %v2650_v42, %v2656_v44 }
0x17bd   :  { %v2658_v32 = vmul.f32 1.442695, %v2657_v45 }
0x17bf   :  { %3397 = vpow2.f32 %v2658_v32 }
0x17c9   :  { %v3398_v47 = vpop.eup %3397 }
0x17ca   :  { %v2660_v48 = vsel %vm1311_vm8, %v3398_v47, 0.0 }
0x17cb   :  { %2661 = vadd.xlane.f32.xlu1 %v2660_v48 }
0x17dc   :  { %1607 = vrot.lane.b32.xlu1 %v3715_v12, %s3439_s5 }
0x17e0   :  { %1611 = vrot.lane.b32.xlu1 %v3717_v15, %s3440_s24 }
0x1858   :  { %v2662_v59 = vpop.xlane.xlu1 %2661 }
0x1859   :  { %3399 = vrcp.f32 %v2662_v59 }
0x1863   :  { %v3400_v49 = vpop.eup %3399 }
0x1864   :  { %v2664_v50 = vmul.f32 %v3400_v49, %v3398_v47 }
0x1866   :  { %3301 = vmatmul.mubr.msk.f32.vlgmr.msra.gmra.mrb[30].mxu0 %vm239_vm6, %v2664_v50  ;;  %3306 = vmatmul.mubr.msk.f32.vlgmr.msra.gmra.mrb[34].mxu1 %vm239_vm6, %v2664_v50 }
0x1867   :  { %3309 = vmatpush3.msra.mxu0 %v3781_v14  ;;  %3314 = vmatpush3.msra.mxu1 %v2501_v30 }
0x1868   :  { %3310 = vmatprep.mubr.msk.f32.mxu0 %vm3427_vm5, %v3426_v19  ;;  %3315 = vmatprep.mubr.msk.f32.mxu1 %vm3427_vm5, %v3426_v19  ;;  %v1608_v19 = vpop.permute.xlu1 %1607 }
0x1869   :  { %v1618_v3 = vsel %vm239_vm6, %v3713_v11, %v1608_v19 }
0x186a   :  { %3311 = vmatmul.mubr.msk.f32.vlgmr.msra.gmra.mrb[32].mxu0 %vm239_vm6, %v2664_v50  ;;  %3316 = vmatmul.mubr.msk.f32.vlgmr.msra.gmra.mrb[36].mxu1 %vm239_vm6, %v2664_v50 }
0x186c   :  { %v1612_v1 = vpop.permute.xlu1 %1611 }
0x186d   :  { %v1619_v4 = vsel %vm1234_vm7, %v1618_v3, %v1612_v1 }
0x1939   :  { %v2734_v12 = vpop.f32.mrb[30].mxu0  ;;  %v2804_v15 = vpop.f32.mrb[34].mxu1 }
0x193a   :  { %2949 = vrot.lane.b32.xlu0 %v2804_v15, %s3439_s5  ;;  %v3302_v51 = vpop.f32.mrb[31].mxu0  ;;  %v3307_v53 = vpop.f32.mrb[35].mxu1 }
0x193d   :  { %v2874_v63 = vpop.f32.mrb[32].mxu0  ;;  %v2944_v55 = vpop.f32.mrb[36].mxu1 }
0x193e   :  { %v3317_v56 = vpop.f32.mrb[37].mxu1  ;;  %2953 = vrot.lane.b32.xlu0 %v2874_v63, %s3440_s24  ;;  %v3312_v57 = vpop.f32.mrb[33].mxu0 }
0x1942   :  { %2957 = vrot.lane.b32.xlu0 %v2944_v55, %s3441_s25 }
0x1946   :  { %1615 = vrot.lane.b32.xlu0 %v3719_v16, %s3441_s25 }
0x19ac   :  { %v2950_v58 = vpop.permute.xlu0 %2949 }
0x19ad   :  { %v2960_v61 = vsel %vm239_vm6, %v2734_v12, %v2950_v58 }
0x19b0   :  { %v2954_v60 = vpop.permute.xlu0 %2953 }
0x19b1   :  { %v2961_v62 = vsel %vm1234_vm7, %v2960_v61, %v2954_v60 }
0x19b4   :  { %v2958_v0 = vpop.permute.xlu0 %2957 }
0x19b5   :  { %v2962_v27 = vsel %vm1620_vm9, %v2961_v62, %v2958_v0 }
0x19b6   :  { %v2964_v16 = vrot.slane %v2962_v27, 7 }
0x19b8   :  { %v1616_v5 = vpop.permute.xlu0 %1615 }
0x19b9   :  { %v1621_v2 = vsel %vm1620_vm9, %v1619_v4, %v1616_v5 }
0x19ba   :  { %v2967_v6 = vsel %vm2966_vm10, %v1621_v2, %v2964_v16 }
0x19bb   :  { %2969 = vst.msk [vmem:[#allocation2] sm:$0x3] %vm2968_vm11, %v2967_v6 }
0x19bc   :  { %3412 = shalt.err (!%p3409_p4)
}
0x19bd   :  { %s3413_s3 = scalar_lea.hbm %s3847_s7, 32 }
0x19be   :  { %p3414_p5 = scmp.ne.s32.totalorder %s3847_s7, %s3413_s3  ;;  %p3417_p6 = scmp.lt.u32.totalorder %s3413_s3, %s3847_s7 }
0x19c0   :  { %p3419_p7 = pnand %p3417_p6, %p3414_p5 }
0x19c2   :  { %3422 = shalt.err (!%p3419_p7)
}
0x19c3   :  { %2979 = dma.vmem_to_hbm [thread:$0]  %s2977_s2, 32, %s3847_s7, [#allocation3]  }
0x19c4   :  { %3423 = dma.done.wait [#allocation3], 32  }
0x19c5   :  { %3424 = vsyncadd [#allocation3], 4294967264 }
0x19c6   :  { %2983 = vsyncpa [#allocation3], 1 }

</bundles_post_ra>
